<compile_context>
chip_gen: v6e
topology: v6e:2x2x1
jax: 0.10.0
libtpu: 0.0.40
codegen_flags: <defaults>
</compile_context>

<pallas_src>
import functools

import jax
import jax.numpy as jnp
from jax.experimental import pallas as pl
from jax.experimental.pallas import tpu as pltpu


def _round_up(n, m):
    return ((n + m - 1) // m) * m


def _mlp_kernel(x_ref, w1_ref, b1_ref, w2_ref, b2_ref, w3_ref, b3_ref, o_ref):
    """Fused 3-layer MLP, all activations transposed (features x batch).

    x_ref : (blk, D)            batch on sublanes (native HBM layout)
    w1    : (H1, D)  w2: (H2, H1)  w3: (1, H2)     PyTorch (out, in) layout
    b1    : (H1, 1)  b2: (H2, 1)   b3: (1, 1)      column biases
    o_ref : (1, 1, blk) float32  -- batch on lanes (lane-dense stores)
    """
    x = x_ref[...]  # keep native dtype (f32 or bf16); MXU accumulates in f32

    # Layer 1: W1 (H1, D) . x^T (D, blk) -> (H1, blk); ReLU.
    # (Dropout == identity in eval mode.)
    h1 = jax.lax.dot_general(
        w1_ref[...], x,
        dimension_numbers=(((1,), (1,)), ((), ())),
        preferred_element_type=jnp.float32,
    )
    h1 = jnp.maximum(h1 + b1_ref[...].astype(jnp.float32), 0.0)

    # Layer 2: W2 (H2, H1) . h1 (H1, blk) -> (H2, blk); ReLU.
    h2 = jnp.dot(w2_ref[...], h1.astype(w2_ref.dtype),
                 preferred_element_type=jnp.float32)
    h2 = jnp.maximum(h2 + b2_ref[...].astype(jnp.float32), 0.0)

    # Output layer: W3 (1, H2) . h2 (H2, blk) -> (1, blk); batch stays on the
    # lane axis -> unmasked lane-dense output stores.
    logits = jnp.dot(w3_ref[...], h2.astype(w3_ref.dtype),
                     preferred_element_type=jnp.float32)
    logits = logits + b3_ref[...].astype(jnp.float32)

    o_ref[0] = jax.nn.sigmoid(logits)  # o_ref is float32


def _pick_block(B, block_b):
    """Pick the batch tile size.

    - B <= 128: single tile equal to the full batch (block dims == array dims,
      so any B is legal).
    - Otherwise: a multiple of 128 that never exceeds B (the last grid step
      overhangs instead of padding x in the wrapper).
    - v7x: for very large B, shrink so the parallel grid keeps ~6 steps (both
      TensorCores busy), but never below 2048 rows.
    """
    if B <= 128:
        return B
    blk = min(block_b, (B // 128) * 128)
    if B > 6 * 2048:
        blk = min(blk, _round_up(pl.cdiv(B, 6), 128))
    return max(blk, 128)


@functools.partial(jax.jit, static_argnames=("block_b",))
def buy_time_predict_mlp(x, w1, b1, w2, b2, w3, b3, *, block_b=4096):
    """Pallas-call wrapper.

    Tiles over the batch dimension with a large lane-dense tile. Weights and
    biases are tiny, live fully in VMEM, and have constant index_maps (no
    re-DMA per step). Output dtype is float32 regardless of input dtype.

    VMEM note: at block_b=4096 the double-buffered x tile (lane-padded) plus
    f32 intermediates stay well under v5e's 16 MiB default scoped VMEM and
    v7x's 32 MiB; if block_b is pushed to 8192 for f32, pass
    pltpu.CompilerParams(vmem_limit_bytes=...) on v5e.
    """
    B, D = x.shape
    H1 = w1.shape[0]
    H2 = w2.shape[0]

    blk = _pick_block(B, block_b)
    grid = (pl.cdiv(B, blk),)

    out = pl.pallas_call(
        _mlp_kernel,
        out_shape=jax.ShapeDtypeStruct((grid[0], 1, blk), jnp.float32),
        grid_spec=pltpu.PrefetchScalarGridSpec(
            num_scalar_prefetch=0,
            grid=grid,
            in_specs=[
                pl.BlockSpec((blk, D), lambda i: (i, 0)),    # x tile (ragged edge OK)
                pl.BlockSpec((H1, D),  lambda i: (0, 0)),    # W1 (out, in)
                pl.BlockSpec((H1, 1),  lambda i: (0, 0)),    # b1 column
                pl.BlockSpec((H2, H1), lambda i: (0, 0)),    # W2 (out, in)
                pl.BlockSpec((H2, 1),  lambda i: (0, 0)),    # b2 column
                pl.BlockSpec((1, H2),  lambda i: (0, 0)),    # W3 (out, in)
                pl.BlockSpec((1, 1),   lambda i: (0, 0)),    # b3
            ],
            # Lane-dense output slab: (1, 1, blk) per step, batch on lanes.
            out_specs=pl.BlockSpec((1, 1, blk), lambda i: (i, 0, 0)),
        ),
        compiler_params=pltpu.CompilerParams(
            # Batch axis is independent across steps -> megacore-shardable.
            dimension_semantics=("parallel",),
        ),
    )(x, w1, b1, w2, b2, w3, b3)

    # (G, 1, blk) -> (G*blk, 1) -> (B, 1): row-major flatten preserves batch
    # order; the slice drops the overhang lanes of the last (ragged) step.
    return out.reshape(grid[0] * blk, 1)[:B]


def init_params(key, input_size, hidden_size1, hidden_size2, dtype=jnp.float32):
    """PyTorch-nn.Linear-style init: U(-1/sqrt(fan_in), 1/sqrt(fan_in)).

    Weights are stored in PyTorch's native (out, in) layout; biases as
    (out, 1) columns (the transposed-activation kernel layout).
    """
    def linear(key, fan_in, fan_out):
        kw, kb = jax.random.split(key)
        bound = 1.0 / jnp.sqrt(jnp.asarray(fan_in, jnp.float32))
        w = jax.random.uniform(kw, (fan_out, fan_in), jnp.float32, -bound, bound)
        b = jax.random.uniform(kb, (fan_out, 1), jnp.float32, -bound, bound)
        return w.astype(dtype), b.astype(dtype)

    k1, k2, k3 = jax.random.split(key, 3)
    w1, b1 = linear(k1, input_size, hidden_size1)
    w2, b2 = linear(k2, hidden_size1, hidden_size2)
    w3, b3 = linear(k3, hidden_size2, 1)
    return w1, b1, w2, b2, w3, b3


def reference_mlp(x, w1, b1, w2, b2, w3, b3):
    """Pure-JAX reference (same dtypes/casts as the kernel); returns float32."""
    f32 = jnp.float32
    h1 = jnp.maximum(
        jnp.dot(x, w1.T, preferred_element_type=f32) + b1.T.astype(f32), 0.0)
    h2 = jnp.maximum(
        jnp.dot(h1.astype(w2.dtype), w2.T, preferred_element_type=f32)
        + b2.T.astype(f32), 0.0)
    logits = (jnp.dot(h2.astype(w3.dtype), w3.T, preferred_element_type=f32)
              + b3.T.astype(f32))
    return jax.nn.sigmoid(logits)


if __name__ == "__main__":
    key = jax.random.PRNGKey(0)
    kx, kp = jax.random.split(key)

    # Shapes consistent with the module's forward: x is [batch, input_size].
    input_size, hidden_size1, hidden_size2 = 32, 64, 32
    params = init_params(kp, input_size, hidden_size1, hidden_size2)

    # --- float32, tiny batch (single full-array tile) ------------------------
    x = jax.random.normal(kx, (8, input_size), dtype=jnp.float32)
    out = jax.block_until_ready(buy_time_predict_mlp(x, *params))
    ref = reference_mlp(x, *params)
    assert out.shape == (8, 1) and out.dtype == jnp.float32
    assert jnp.allclose(out, ref, atol=1e-4, rtol=1e-4), "f32 tiny-batch mismatch"

    # --- float32, ragged batch (multi-step grid + overhanging last block) ----
    x1 = jax.random.normal(kx, (1000, input_size), dtype=jnp.float32)
    out1 = jax.block_until_ready(buy_time_predict_mlp(x1, *params))
    ref1 = reference_mlp(x1, *params)
    assert out1.shape == (1000, 1)
    assert jnp.allclose(out1, ref1, atol=1e-4, rtol=1e-4), "f32 ragged mismatch"

    # --- bfloat16 operands (production path: raises MXU rate), f32 output ----
    x2 = jax.random.normal(kx, (1000, input_size), jnp.float32).astype(jnp.bfloat16)
    params_bf16 = tuple(p.astype(jnp.bfloat16) for p in params)
    out2 = jax.block_until_ready(buy_time_predict_mlp(x2, *params_bf16))
    ref2 = reference_mlp(x2, *params_bf16)
    assert out2.shape == (1000, 1) and out2.dtype == jnp.float32
    assert jnp.allclose(out2, ref2, atol=2e-2), "bf16 kernel mismatch"

    print("KERNEL_OK")
</pallas_src>

<mosaic_0001>
module attributes {stable_mosaic.version = 11 : i64} {
  func.func @_mlp_kernel(%arg0: i32, %arg1: memref<8x32xf32, #tpu.memory_space<vmem>>, %arg2: memref<64x32xf32, #tpu.memory_space<vmem>>, %arg3: memref<64x1xf32, #tpu.memory_space<vmem>>, %arg4: memref<32x64xf32, #tpu.memory_space<vmem>>, %arg5: memref<32x1xf32, #tpu.memory_space<vmem>>, %arg6: memref<1x32xf32, #tpu.memory_space<vmem>>, %arg7: memref<1x1xf32, #tpu.memory_space<vmem>>, %arg8: memref<1x1x8xf32, #tpu.memory_space<vmem>>) attributes {dimension_semantics = [#tpu.dimension_semantics<parallel>], iteration_bounds = array<i64: 1>, scalar_prefetch = 0 : i64, scratch_operands = 0 : i64, tpu.core_type = #tpu.core_type<tc>, window_params = [{transform_indices = @transform_0, window_bounds = array<i64: 8, 32>}, {pipeline_mode = #tpu.pipeline_mode<synchronous>, transform_indices = @transform_1, window_bounds = array<i64: 64, 32>}, {pipeline_mode = #tpu.pipeline_mode<synchronous>, transform_indices = @transform_2, window_bounds = array<i64: 64, 1>}, {pipeline_mode = #tpu.pipeline_mode<synchronous>, transform_indices = @transform_3, window_bounds = array<i64: 32, 64>}, {pipeline_mode = #tpu.pipeline_mode<synchronous>, transform_indices = @transform_4, window_bounds = array<i64: 32, 1>}, {pipeline_mode = #tpu.pipeline_mode<synchronous>, transform_indices = @transform_5, window_bounds = array<i64: 1, 32>}, {pipeline_mode = #tpu.pipeline_mode<synchronous>, transform_indices = @transform_6, window_bounds = array<i64: 1, 1>}, {transform_indices = @transform_7, window_bounds = array<i64: 1, 1, 8>}]} {
    %c0 = arith.constant 0 : index
    %c0_0 = arith.constant 0 : index
    %0 = vector.load %arg1[%c0, %c0_0] : memref<8x32xf32, #tpu.memory_space<vmem>>, vector<8x32xf32>
    %c0_1 = arith.constant 0 : index
    %c0_2 = arith.constant 0 : index
    %1 = vector.load %arg2[%c0_1, %c0_2] : memref<64x32xf32, #tpu.memory_space<vmem>>, vector<64x32xf32>
    %cst = arith.constant dense<0.000000e+00> : vector<64x8xf32>
    %2 = tpu.matmul %1, %0, %cst {dimension_numbers = #tpu.dot_dimension_numbers<[1], [1], [0], [0], [0, 0, 1, 0], [], []>} : vector<64x32xf32>, vector<8x32xf32>, vector<64x8xf32> -> vector<64x8xf32>
    %c0_3 = arith.constant 0 : index
    %c0_4 = arith.constant 0 : index
    %3 = vector.load %arg3[%c0_3, %c0_4] : memref<64x1xf32, #tpu.memory_space<vmem>>, vector<64x1xf32>
    %4 = vector.broadcast %3 : vector<64x1xf32> to vector<64x8xf32>
    %5 = arith.addf %2, %4 : vector<64x8xf32>
    %cst_5 = arith.constant 0.000000e+00 : f32
    %6 = vector.broadcast %cst_5 : f32 to vector<64x8xf32>
    %7 = arith.maximumf %5, %6 : vector<64x8xf32>
    %c0_6 = arith.constant 0 : index
    %c0_7 = arith.constant 0 : index
    %8 = vector.load %arg4[%c0_6, %c0_7] : memref<32x64xf32, #tpu.memory_space<vmem>>, vector<32x64xf32>
    %cst_8 = arith.constant dense<0.000000e+00> : vector<32x8xf32>
    %9 = tpu.matmul %8, %7, %cst_8 {dimension_numbers = #tpu.dot_dimension_numbers<[1], [0], [0], [1], [0, 0, 1, 1], [], []>} : vector<32x64xf32>, vector<64x8xf32>, vector<32x8xf32> -> vector<32x8xf32>
    %c0_9 = arith.constant 0 : index
    %c0_10 = arith.constant 0 : index
    %10 = vector.load %arg5[%c0_9, %c0_10] : memref<32x1xf32, #tpu.memory_space<vmem>>, vector<32x1xf32>
    %11 = vector.broadcast %10 : vector<32x1xf32> to vector<32x8xf32>
    %12 = arith.addf %9, %11 : vector<32x8xf32>
    %cst_11 = arith.constant 0.000000e+00 : f32
    %13 = vector.broadcast %cst_11 : f32 to vector<32x8xf32>
    %14 = arith.maximumf %12, %13 : vector<32x8xf32>
    %c0_12 = arith.constant 0 : index
    %c0_13 = arith.constant 0 : index
    %15 = vector.load %arg6[%c0_12, %c0_13] : memref<1x32xf32, #tpu.memory_space<vmem>>, vector<1x32xf32>
    %cst_14 = arith.constant dense<0.000000e+00> : vector<1x8xf32>
    %16 = tpu.matmul %15, %14, %cst_14 {dimension_numbers = #tpu.dot_dimension_numbers<[1], [0], [0], [1], [0, 0, 1, 1], [], []>} : vector<1x32xf32>, vector<32x8xf32>, vector<1x8xf32> -> vector<1x8xf32>
    %c0_15 = arith.constant 0 : index
    %c0_16 = arith.constant 0 : index
    %17 = vector.load %arg7[%c0_15, %c0_16] : memref<1x1xf32, #tpu.memory_space<vmem>>, vector<1x1xf32>
    %18 = vector.broadcast %17 : vector<1x1xf32> to vector<1x8xf32>
    %19 = arith.addf %16, %18 : vector<1x8xf32>
    %20 = arith.negf %19 : vector<1x8xf32>
    %21 = math.exp %20 : vector<1x8xf32>
    %cst_17 = arith.constant 1.000000e+00 : f32
    %22 = vector.broadcast %cst_17 : f32 to vector<1x8xf32>
    %23 = arith.addf %22, %21 : vector<1x8xf32>
    %24 = arith.divf %22, %23 : vector<1x8xf32>
    %c0_18 = arith.constant 0 : index
    %c0_19 = arith.constant 0 : index
    %c0_20 = arith.constant 0 : index
    %25 = vector.load %arg8[%c0_18, %c0_19, %c0_20] : memref<1x1x8xf32, #tpu.memory_space<vmem>>, vector<1x1x8xf32>
    %26 = vector.shape_cast %25 : vector<1x1x8xf32> to vector<1x8xf32>
    %27 = vector.shape_cast %24 : vector<1x8xf32> to vector<1x1x8xf32>
    tpu.vector_store %arg8[%c0_18, %c0_19, %c0_20], %27 {strides = array<i32>} : memref<1x1x8xf32, #tpu.memory_space<vmem>>, vector<1x1x8xf32>,
    return
  }
  func.func @transform_0(%arg0: i32) -> (i32, i32) {
    %c0_i32 = arith.constant 0 : i32
    %c0_i32_0 = arith.constant 0 : i32
    return %arg0, %c0_i32 : i32, i32
  }
  func.func @transform_1(%arg0: i32) -> (i32, i32) {
    %c0_i32 = arith.constant 0 : i32
    %c0_i32_0 = arith.constant 0 : i32
    %c0_i32_1 = arith.constant 0 : i32
    return %c0_i32, %c0_i32_0 : i32, i32
  }
  func.func @transform_2(%arg0: i32) -> (i32, i32) {
    %c0_i32 = arith.constant 0 : i32
    %c0_i32_0 = arith.constant 0 : i32
    %c0_i32_1 = arith.constant 0 : i32
    return %c0_i32, %c0_i32_0 : i32, i32
  }
  func.func @transform_3(%arg0: i32) -> (i32, i32) {
    %c0_i32 = arith.constant 0 : i32
    %c0_i32_0 = arith.constant 0 : i32
    %c0_i32_1 = arith.constant 0 : i32
    return %c0_i32, %c0_i32_0 : i32, i32
  }
  func.func @transform_4(%arg0: i32) -> (i32, i32) {
    %c0_i32 = arith.constant 0 : i32
    %c0_i32_0 = arith.constant 0 : i32
    %c0_i32_1 = arith.constant 0 : i32
    return %c0_i32, %c0_i32_0 : i32, i32
  }
  func.func @transform_5(%arg0: i32) -> (i32, i32) {
    %c0_i32 = arith.constant 0 : i32
    %c0_i32_0 = arith.constant 0 : i32
    %c0_i32_1 = arith.constant 0 : i32
    return %c0_i32, %c0_i32_0 : i32, i32
  }
  func.func @transform_6(%arg0: i32) -> (i32, i32) {
    %c0_i32 = arith.constant 0 : i32
    %c0_i32_0 = arith.constant 0 : i32
    %c0_i32_1 = arith.constant 0 : i32
    return %c0_i32, %c0_i32_0 : i32, i32
  }
  func.func @transform_7(%arg0: i32) -> (i32, i32, i32) {
    %c0_i32 = arith.constant 0 : i32
    %c0_i32_0 = arith.constant 0 : i32
    %c0_i32_1 = arith.constant 0 : i32
    return %arg0, %c0_i32, %c0_i32_0 : i32, i32, i32
  }
}

</mosaic_0001>

<bundles_post_ra>
// kernel: buy_time_predict_mlp.1
= control target key start
LH: loop header
LB: loop body
LE: loop exit
PB: predicated region body
PF: predicated region fallthrough
CT: control target
= control target key end

     0   :  { %s726_s0 = inlined_call_operand.vmem [shape: f32[8,32], index: 0, kind: input, shape index: {}]   ;;  %s727_s1 = inlined_call_operand.vmem [shape: f32[64,32], index: 1, kind: input, shape index: {}]   ;;  %s728_s2 = inlined_call_operand.vmem [shape: f32[64,1], index: 2, kind: input, shape index: {}]   ;;  %s729_s3 = inlined_call_operand.vmem [shape: f32[32,64], index: 3, kind: input, shape index: {}]   ;;  %s730_s4 = inlined_call_operand.vmem [shape: f32[32,1], index: 4, kind: input, shape index: {}]   ;;  %s731_s5 = inlined_call_operand.vmem [shape: f32[1,32], index: 5, kind: input, shape index: {}]   ;;  %s732_s6 = inlined_call_operand.<no memory space> [shape: f32[1,1], index: 6, kind: input, shape index: {}]   ;;  %s733_s7 = inlined_call_operand.hbm [shape: f32[1,1,8], index: 7, kind: output, shape index: {}]  }
   0x1   :  { %v12_v0 = vstv %s732_s6 }
   0x2   :  { %13 = vst [vmem:[#allocation2] sm:$0x1] %v12_v0 }
   0x3   :  { %v29_v1 = vld [vmem:[%s726_s0] sm:$0xff]  ;;  %vm86_vm0 = vcmask 261120   ;;  %v31_v3 = vld [vmem:[%s727_s1 + $0x8] sm:$0xff]  ;;  %v583_v4 = vmov 0   ;;  %v32_v5 = vld [vmem:[%s727_s1 + $0x10] sm:$0xff] }
   0x4   :  { %v30_v2 = vld [vmem:[%s727_s1] sm:$0xff]  ;;  %504 = vmatprep.subr.msk.mxu0 %vm86_vm0, %v29_v1  ;;  %555 = vset.pattern.permute.xlu0 %v583_v4  ;;  %v45_v6 = vld [vmem:[%s728_s2 + $0x38] sm:$0xff]  ;;  %v43_v7 = vld [vmem:[%s728_s2 + $0x28] sm:$0xff] }
   0x5   :  { %506 = vmatprep.mubr.msk.f32.mxu0 %vm86_vm0, %v30_v2  ;;  %505 = vmatpush3.xpose.msk.msra.mxu0 %vm86_vm0, %v29_v1  ;;  %v44_v8 = vld [vmem:[%s728_s2 + $0x30] sm:$0xff]  ;;  %v42_v9 = vld [vmem:[%s728_s2 + $0x20] sm:$0xff]  ;;  %v33_v10 = vld [vmem:[%s727_s1 + $0x18] sm:$0xff] }
   0x6   :  { %556 = vset.pattern.permute.xlu1 %v583_v4  ;;  %83 = vperm.xlu0 %555, %v45_v6   ;;  %v34_v11 = vld [vmem:[%s727_s1 + $0x20] sm:$0xff] }
   0x7   :  { %73 = vperm.xlu1 %556, %v43_v7  }
   0x8   :  { %507 = vmatmul.mubr.msk.f32.vlgmr.msra.gmra.mxu0 %vm86_vm0, %v31_v3 }
   0x9   :  { %509 = vmatprep.mubr.msk.f32.mxu0 %vm86_vm0, %v32_v5 }
   0xa   :  { %14 = vsyncpa [#allocation4], 0  ;;  %78 = vperm.xlu0 %555, %v44_v8   ;;  %v41_v12 = vld [vmem:[%s728_s2 + $0x18] sm:$0xff]  ;;  %v40_v13 = vld [vmem:[%s728_s2 + $0x10] sm:$0xff]  ;;  %vm255_vm1 = vcmask 523264   ;;  %v584_v60 = vmov 0.0  }
   0xb   :  { %68 = vperm.xlu1 %556, %v42_v9   ;;  %v35_v14 = vld [vmem:[%s727_s1 + $0x28] sm:$0xff]  ;;  %v36_v15 = vld [vmem:[%s727_s1 + $0x30] sm:$0xff]  ;;  %v38_v17 = vld [vmem:[%s728_s2] sm:$0xff]  ;;  %540 = vmatprep.subr.mxu0 %v584_v60  ;;  %vm585_vm2 = vmmov 0   ;;  %s586_s24 = smov [#allocation3]   ;;  %vm447_vm3 = vcmask 57344  }
   0xc   :  { %510 = vmatmul.mubr.msk.f32.gmra.mxu0 %vm86_vm0, %v33_v10  ;;  %v39_v16 = vld [vmem:[%s728_s2 + $0x8] sm:$0xff]  ;;  %v37_v18 = vld [vmem:[%s727_s1 + $0x38] sm:$0xff]  ;;  %v233_v20 = vld [vmem:[%s730_s4 + $0x10] sm:$0xff]  ;;  %s455_s25 = sshll.u32 %s586_s24, 4  ;;  %s456_s25 = int_to_ptr.vmem [resolvable:$true] %s455_s25 }
   0xd   :  { %512 = vmatprep.mubr.msk.f32.mxu0 %vm86_vm0, %v34_v11  ;;  %v234_v19 = vld [vmem:[%s730_s4 + $0x18] sm:$0xff]  ;;  %v232_v21 = vld [vmem:[%s730_s4 + $0x8] sm:$0xff]  ;;  %v231_v22 = vld [vmem:[%s730_s4] sm:$0xff]  ;;  %s565_s26 = scalar_lea.vmem %s456_s25, 32  ;;  %p566_p1 = scmp.lt.s32.totalorder %s456_s25, %s456_s25 }
   0xe   :  { %63 = vperm.xlu0 %555, %v41_v12   ;;  %v358_v23 = vld [vmem:[#allocation2] sm:$0x1]  ;;  %v228_v57 = vld [vmem:[%s729_s3 + $0x8] sm:$0xff]  ;;  %v229_v58 = vld [vmem:[%s729_s3 + $0x10] sm:$0xff] }
   0xf   :  { %58 = vperm.xlu1 %556, %v40_v13   ;;  %v227_v24 = vld [vmem:[%s729_s3] sm:$0xff]  ;;  %v230_v59 = vld [vmem:[%s729_s3 + $0x18] sm:$0xff] }
  0x10   :  { %513 = vmatmul.mubr.msk.f32.gmra.mxu0 %vm86_vm0, %v35_v14  ;;  %534 = vmatprep.mubr.msk.f32.mxu1 %vm255_vm1, %v227_v24  ;;  %v357_v13 = vld [vmem:[%s731_s5] sm:$0x1]  ;;  %v364_v14 = vlaneseq  ;;  %s561_s5 = scalar_lea.vmem %s456_s25, 16 }
  0x11   :  { %515 = vmatprep.mubr.msk.f32.mxu0 %vm86_vm0, %v36_v15  ;;  %p562_p0 = scmp.ne.s32.totalorder %s456_s25, %s561_s5  ;;  %p567_p2 = scmp.lt.s32.totalorder %s565_s26, %s561_s5 }
  0x12   :  { %53 = vperm.xlu0 %555, %v39_v16   ;;  %v365_v15 = vshrl.u32 %v364_v14, 7 }
  0x13   :  { %48 = vperm.xlu1 %556, %v38_v17   ;;  %p568_p3 = por %p567_p2, %p566_p1 }
  0x14   :  { %516 = vmatmul.mubr.msk.f32.gmra.mxu0 %vm86_vm0, %v37_v18  ;;  %v366_v16 = vsub.s32 0, %v365_v15 }
  0x15   :  { %548 = vmatprep.mubr.msk.f32.mxu0 %vm585_vm2, %v584_v60  ;;  %p569_p4 = pnand %p568_p3, %p562_p0 }
  0x16   :  { %252 = vperm.xlu0 %555, %v234_v19  }
  0x17   :  { %247 = vperm.xlu1 %556, %v233_v20  }
  0x1a   :  { %242 = vperm.xlu0 %555, %v232_v21  }
  0x1b   :  { %237 = vperm.xlu1 %556, %v231_v22  }
  0x1e   :  { %361 = vperm.xlu0 %555, %v358_v23  }
  0x81   :  { %v84_v27 = vpop.permute.xlu0 %83 }
  0x82   :  { %v74_v28 = vpop.permute.xlu1 %73 }
  0x85   :  { %v79_v32 = vpop.permute.xlu0 %78 }
  0x86   :  { %v69_v33 = vpop.permute.xlu1 %68 }
  0x89   :  { %v64_v41 = vpop.permute.xlu0 %63 }
  0x8a   :  { %v59_v42 = vpop.permute.xlu1 %58 }
  0x8d   :  { %v54_v49 = vpop.permute.xlu0 %53 }
  0x8e   :  { %v49_v50 = vpop.permute.xlu1 %48 }
  0x91   :  { %v253_v61 = vpop.permute.xlu0 %252 }
  0x92   :  { %v248_v63 = vpop.permute.xlu1 %247 }
  0x95   :  { %v243_v3 = vpop.permute.xlu0 %242 }
  0x96   :  { %v238_v8 = vpop.permute.xlu1 %237 }
  0x99   :  { %v362_v17 = vpop.permute.xlu0 %361 }
  0x9a   :  { %v367_v18 = vrot.slane %v362_v17, %v366_v16 }
  0xc8   :  { %v508_v25 = vpop.f32.mrf.mxu0 }
  0xc9   :  { %v186_v51 = vadd.f32 %v508_v25, %v54_v49 }
  0xca   :  { %v180_v26 = vpop.f32.mrf.mxu0 }
  0xcb   :  { %v181_v53 = vadd.f32 %v180_v26, %v49_v50  ;;  %v220_v55 = vmax.f32 %v186_v51, 0.0 }
  0xcc   :  { %v511_v29 = vpop.f32.mrf.mxu0 }
  0xcd   :  { %v196_v45 = vadd.f32 %v511_v29, %v64_v41  ;;  %v219_v56 = vmax.f32 %v181_v53, 0.0 }
  0xce   :  { %v190_v30 = vpop.f32.mrf.mxu0 }
  0xcf   :  { %v191_v47 = vadd.f32 %v190_v30, %v59_v42  ;;  %v222_v52 = vmax.f32 %v196_v45, 0.0 }
  0xd0   :  { %v514_v31 = vpop.f32.mrf.mxu0 }
  0xd1   :  { %v206_v38 = vadd.f32 %v514_v31, %v74_v28  ;;  %v221_v54 = vmax.f32 %v191_v47, 0.0 }
  0xd2   :  { %v200_v34 = vpop.f32.mrf.mxu0 }
  0xd3   :  { %v201_v43 = vadd.f32 %v200_v34, %v69_v33  ;;  %v224_v46 = vmax.f32 %v206_v38, 0.0 }
  0xd4   :  { %v517_v35 = vpop.f32.mrf.mxu0 }
  0xd5   :  { %v216_v36 = vadd.f32 %v517_v35, %v84_v27  ;;  %v223_v48 = vmax.f32 %v201_v43, 0.0 }
  0xd6   :  { %v210_v37 = vpop.f32.mrf.mxu0 }
  0xd7   :  { %v226_v39 = vmax.f32 %v216_v36, 0.0  ;;  %v211_v40 = vadd.f32 %v210_v37, %v79_v32 }
  0xd9   :  { %v225_v44 = vmax.f32 %v211_v40, 0.0  ;;  %518 = vmatprep.subr.mxu1 %v226_v39 }
  0xda   :  { %519 = vmatpush3.msra.mxu1 %v226_v39 }
  0xdb   :  { %520 = vmatprep.subr.mxu1 %v225_v44 }
  0xdc   :  { %521 = vmatpush3.msra.mxu1 %v225_v44 }
  0xdd   :  { %522 = vmatprep.subr.mxu1 %v224_v46 }
  0xde   :  { %523 = vmatpush3.msra.mxu1 %v224_v46 }
  0xdf   :  { %524 = vmatprep.subr.mxu1 %v223_v48 }
  0xe0   :  { %525 = vmatpush3.msra.mxu1 %v223_v48 }
  0xe1   :  { %526 = vmatprep.subr.mxu1 %v222_v52 }
  0xe2   :  { %527 = vmatpush3.msra.mxu1 %v222_v52 }
  0xe3   :  { %528 = vmatprep.subr.mxu1 %v221_v54 }
  0xe4   :  { %529 = vmatpush3.msra.mxu1 %v221_v54 }
  0xe5   :  { %530 = vmatprep.subr.mxu1 %v220_v55 }
  0xe6   :  { %531 = vmatpush3.msra.mxu1 %v220_v55 }
  0xe7   :  { %532 = vmatprep.subr.mxu1 %v219_v56 }
  0xe8   :  { %533 = vmatpush3.msra.mxu1 %v219_v56 }
  0xe9   :  { %535 = vmatmul.mubr.msk.f32.vlgmr.msra.gmra.mxu1 %vm255_vm1, %v228_v57 }
  0xea   :  { %537 = vmatprep.mubr.msk.f32.mxu1 %vm255_vm1, %v229_v58 }
  0xed   :  { %538 = vmatmul.mubr.msk.f32.gmra.mxu1 %vm255_vm1, %v230_v59 }
 0x1a9   :  { %v536_v62 = vpop.f32.mrf.mxu1 }
 0x1aa   :  { %v340_v5 = vadd.f32 %v536_v62, %v243_v3 }
 0x1ab   :  { %v334_v0 = vpop.f32.mrf.mxu1 }
 0x1ac   :  { %v335_v9 = vadd.f32 %v334_v0, %v238_v8  ;;  %v354_v11 = vmax.f32 %v340_v5, 0.0 }
 0x1ad   :  { %v539_v1 = vpop.f32.mrf.mxu1 }
 0x1ae   :  { %v350_v2 = vadd.f32 %v539_v1, %v253_v61  ;;  %v353_v12 = vmax.f32 %v335_v9, 0.0 }
 0x1af   :  { %v344_v4 = vpop.f32.mrf.mxu1 }
 0x1b0   :  { %v356_v6 = vmax.f32 %v350_v2, 0.0  ;;  %v345_v7 = vadd.f32 %v344_v4, %v248_v63 }
 0x1b2   :  { %v355_v10 = vmax.f32 %v345_v7, 0.0  ;;  %541 = vmatpush3.msra.mxu0 %v356_v6 }
 0x1b3   :  { %542 = vmatprep.subr.mxu0 %v584_v60 }
 0x1b4   :  { %543 = vmatpush3.msra.mxu0 %v355_v10 }
 0x1b5   :  { %544 = vmatprep.subr.mxu0 %v584_v60 }
 0x1b6   :  { %545 = vmatpush3.msra.mxu0 %v354_v11 }
 0x1b7   :  { %546 = vmatprep.subr.mxu0 %v584_v60 }
 0x1b8   :  { %547 = vmatpush3.msra.mxu0 %v353_v12 }
 0x1b9   :  { %549 = vmatmul.mubr.msk.f32.vlgmr.msra.gmra.mxu0 %vm86_vm0, %v357_v13 }
 0x279   :  { %v437_v19 = vpop.f32.mrf.mxu0 }
 0x27a   :  { %v438_v20 = vadd.f32 %v437_v19, %v367_v18 }
 0x27b   :  { %v550_v21 = vpop.f32.mrf.mxu0 }
 0x27c   :  { %v477_v22 = vmul.f32 -1.442695, %v438_v20 }
 0x27e   :  { %557 = vpow2.f32 %v477_v22 }
 0x28b   :  { %v558_v23 = vpop.eup %557 }
 0x28c   :  { %v444_v24 = vadd.f32 1.0, %v558_v23 }
 0x28e   :  { %559 = vrcp.f32 %v444_v24 }
 0x29b   :  { %v560_v25 = vpop.eup %559 }
 0x29c   :  { %448 = vst.msk [vmem:[#allocation3] sm:$0x1] %vm447_vm3, %v560_v25 }
 0x29d   :  { %572 = shalt.err (!%p569_p4)
}
 0x29e   :  { %458 = dma.vmem_to_hbm [thread:$0]  %s456_s25, 16, %s733_s7, [#allocation4]  }
 0x29f   :  { %581 = dma.done.wait [#allocation4], 16  }
 0x2a0   :  { %582 = vsyncadd [#allocation4], 4294967280 }
 0x2a1   :  { %462 = vsyncpa [#allocation4], 1 }

</bundles_post_ra>
